<compile_context>
chip_gen: v6e
topology: v6e:2x2x1
jax: 0.10.0
libtpu: 0.0.40
codegen_flags: <defaults>
</compile_context>

<pallas_src>
import functools

import jax
import jax.numpy as jnp
from jax.experimental import pallas as pl
from jax.experimental.pallas import tpu as pltpu


def _round_up(x, m):
    return (x + m - 1) // m * m


# ---------------------------------------------------------------------------
# Kernel 1: concat attention + fused GRU cell (single invocation, all-VMEM).
# ---------------------------------------------------------------------------
def attn_gru_kernel(emb_ref, hid_ref, enc_ref,
                    wa_e_ref,
                    wi_emb_ref, wi_ctx_ref, wh_ref,
                    bi_ref, bh_ref,
                    hnew_ref):
    emb = emb_ref[...]            # [B, E]
    h = hid_ref[...]              # [B, H]
    enc = enc_ref[...]            # [B, L, He]

    # ---- concat attention ------------------------------------------------
    # energy[b,l] = Wa . [h_b ; enc_{b,l}] + ba.  The hidden-state term and the
    # bias are constant along the softmax (seq) axis, so they cancel exactly
    # under softmax and are dropped here (the JAX reference keeps them).
    energy = jnp.sum(enc * wa_e_ref[...][None, :, :], axis=-1)        # [B, L]
    m = jnp.max(energy, axis=-1, keepdims=True)
    p = jnp.exp(energy - m)                                           # [B, L]
    inv_denom = pl.reciprocal(jnp.sum(p, axis=-1, keepdims=True))     # [B, 1]
    # Context on the MXU with unnormalized weights; fold 1/denom in afterwards.
    ctx = jnp.einsum('bql,ble->bqe', p[:, None, :], enc,
                     preferred_element_type=jnp.float32)[:, 0, :]     # [B, He]
    ctx = ctx * inv_denom

    # ---- GRU cell (PyTorch gate order r, z, n), fused gate matmuls ---------
    gx = (jnp.dot(emb, wi_emb_ref[...], preferred_element_type=jnp.float32)
          + jnp.dot(ctx, wi_ctx_ref[...], preferred_element_type=jnp.float32)
          + bi_ref[...])                                              # [B, 3H]
    gh = (jnp.dot(h, wh_ref[...], preferred_element_type=jnp.float32)
          + bh_ref[...])                                              # [B, 3H]

    H = hnew_ref.shape[1]
    r = jax.nn.sigmoid(gx[:, 0:H] + gh[:, 0:H])
    z = jax.nn.sigmoid(gx[:, H:2 * H] + gh[:, H:2 * H])
    n = jnp.tanh(gx[:, 2 * H:3 * H] + r * gh[:, 2 * H:3 * H])
    hnew_ref[...] = (1.0 - z) * n + z * h


# ---------------------------------------------------------------------------
# Kernel 2: output projection, tiled over the vocab axis.
# ---------------------------------------------------------------------------
def out_proj_kernel(h_ref, w_ref, b_ref, o_ref):
    o_ref[...] = (jnp.dot(h_ref[...], w_ref[...],
                          preferred_element_type=jnp.float32)
                  + b_ref[...])


# ---------------------------------------------------------------------------
# Wrapper
# ---------------------------------------------------------------------------
def decoder_forward(inputs, last_hidden, encoder_hiddens, packed, *, tile_v=2048):
    """inputs: [B,1] int32 ids; last_hidden: [1,B,H]; encoder_hiddens: [B,L,He]."""
    assert tile_v % 128 == 0
    embedded = jnp.take(packed["embedding"], inputs[:, 0], axis=0)    # [B, E]
    hid = last_hidden[0]                                              # [B, H]
    enc = encoder_hiddens                                             # [B, L, He]

    B = embedded.shape[0]
    H = hid.shape[1]
    V = packed["w_out_T"].shape[1]

    # ---- pad batch up to the 8-sublane tile --------------------------------
    B_pad = max(_round_up(B, 8), 8)
    if B_pad != B:
        embedded = jnp.pad(embedded, ((0, B_pad - B), (0, 0)))
        hid = jnp.pad(hid, ((0, B_pad - B), (0, 0)))
        enc = jnp.pad(enc, ((0, B_pad - B), (0, 0), (0, 0)))

    vmem = pl.BlockSpec(memory_space=pltpu.MemorySpace.VMEM)

    h_new = pl.pallas_call(
        attn_gru_kernel,
        out_shape=jax.ShapeDtypeStruct((B_pad, H), jnp.float32),
        in_specs=[vmem] * 9,
        out_specs=vmem,
        compiler_params=pltpu.CompilerParams(vmem_limit_bytes=32 * 1024 * 1024),
    )(embedded, hid, enc,
      packed["wa_e"],
      packed["wi_emb"], packed["wi_ctx"], packed["wh"],
      packed["bi"], packed["bh"])

    # ---- output projection: grid over V, lane-dense tiles ------------------
    tile_v = min(tile_v, _round_up(V, 128))
    V_pad = _round_up(V, tile_v)
    w_out = packed["w_out_T"]
    b_out = packed["b_out"]
    if V_pad != V:
        w_out = jnp.pad(w_out, ((0, 0), (0, V_pad - V)))
        b_out = jnp.pad(b_out, ((0, 0), (0, V_pad - V)))
    n_tiles = V_pad // tile_v

    logits = pl.pallas_call(
        out_proj_kernel,
        out_shape=jax.ShapeDtypeStruct((B_pad, V_pad), jnp.float32),
        grid=(n_tiles,),
        in_specs=[pl.BlockSpec((B_pad, H), lambda j: (0, 0)),       # resident
                  pl.BlockSpec((H, tile_v), lambda j: (0, j)),      # streamed
                  pl.BlockSpec((1, tile_v), lambda j: (0, j))],
        out_specs=pl.BlockSpec((B_pad, tile_v), lambda j: (0, j)),
        compiler_params=pltpu.CompilerParams(
            dimension_semantics=("parallel",),
            vmem_limit_bytes=32 * 1024 * 1024),
    )(h_new, w_out, b_out)

    logits = logits[:B, :V]
    h_new = h_new[:B, :]
    return logits[:, None, :], h_new[None, :, :]


# ---------------------------------------------------------------------------
# Parameter construction / packing
# ---------------------------------------------------------------------------
def make_params(key, vocab, emb_dim, en_hidden, de_hidden):
    rnn_dim = emb_dim + en_hidden          # embedding_dim + en_hidden (unidirectional)
    keys = jax.random.split(key, 16)
    s = 0.1

    def rnd(k, shape):
        return jax.random.normal(k, shape, dtype=jnp.float32) * s

    params = {
        "embedding": rnd(keys[0], (vocab, emb_dim)),
        # attn = Linear(en_hidden + de_hidden, 1); weight split into hidden / encoder parts
        "wa_h": rnd(keys[1], (1, de_hidden)),
        "wa_e": rnd(keys[2], (1, en_hidden)),
        "ba":   rnd(keys[3], (1, 1)),
        # GRU weights (pre-transposed: [in_dim, H])
        "w_ir_T": rnd(keys[4], (rnn_dim, de_hidden)),
        "w_iz_T": rnd(keys[5], (rnn_dim, de_hidden)),
        "w_in_T": rnd(keys[6], (rnn_dim, de_hidden)),
        "w_hr_T": rnd(keys[7], (de_hidden, de_hidden)),
        "w_hz_T": rnd(keys[8], (de_hidden, de_hidden)),
        "w_hn_T": rnd(keys[9], (de_hidden, de_hidden)),
        "b_ir": rnd(keys[10], (1, de_hidden)),
        "b_iz": rnd(keys[11], (1, de_hidden)),
        "b_in": rnd(keys[12], (1, de_hidden)),
        "b_hr": rnd(keys[13], (1, de_hidden)),
        "b_hz": rnd(keys[14], (1, de_hidden)),
        "b_hn": rnd(keys[15], (1, de_hidden)),
    }
    k2 = jax.random.split(keys[15], 2)
    params["w_out_T"] = rnd(k2[0], (de_hidden, vocab))
    params["b_out"] = rnd(k2[1], (1, vocab))
    # TODO(synk): transform_layer from __init__ is never used in forward(); omitted.
    return params


def pack_params(params, emb_dim):
    """Fuse per-gate GRU weights into [., 3H] slabs and split the input side."""
    E = emb_dim
    wi = jnp.concatenate([params["w_ir_T"], params["w_iz_T"], params["w_in_T"]], axis=1)
    wh = jnp.concatenate([params["w_hr_T"], params["w_hz_T"], params["w_hn_T"]], axis=1)
    bi = jnp.concatenate([params["b_ir"], params["b_iz"], params["b_in"]], axis=1)
    bh = jnp.concatenate([params["b_hr"], params["b_hz"], params["b_hn"]], axis=1)
    # TODO(synk): for realistic H/V the big slabs (wi_*, wh, w_out_T) can be cast
    # to bf16 to halve HBM traffic; kept f32 here to preserve exact semantics.
    return {
        "embedding": params["embedding"],
        "wa_e": params["wa_e"],
        "wi_emb": wi[:E, :],      # rows for the embedded features
        "wi_ctx": wi[E:, :],      # rows for the attention context
        "wh": wh,
        "bi": bi,
        "bh": bh,
        "w_out_T": params["w_out_T"],
        "b_out": params["b_out"],
    }


# ---------------------------------------------------------------------------
# Pure-JAX reference (keeps the full, un-simplified attention energy)
# ---------------------------------------------------------------------------
def reference_forward(inputs, last_hidden, encoder_hiddens, params):
    embedded = jnp.take(params["embedding"], inputs[:, 0], axis=0)    # [B, E]
    h = last_hidden[0]                                                # [B, H]
    enc = encoder_hiddens                                             # [B, L, He]
    energy = (jnp.sum(h * params["wa_h"], axis=-1, keepdims=True)
              + jnp.sum(enc * params["wa_e"][None, :, :], axis=-1)
              + params["ba"])
    attn_w = jax.nn.softmax(energy, axis=-1)
    ctx = jnp.sum(attn_w[:, :, None] * enc, axis=1)
    x = jnp.concatenate([embedded, ctx], axis=-1)
    r = jax.nn.sigmoid(x @ params["w_ir_T"] + params["b_ir"] + h @ params["w_hr_T"] + params["b_hr"])
    z = jax.nn.sigmoid(x @ params["w_iz_T"] + params["b_iz"] + h @ params["w_hz_T"] + params["b_hz"])
    n = jnp.tanh(x @ params["w_in_T"] + params["b_in"] + r * (h @ params["w_hn_T"] + params["b_hn"]))
    h_new = (1.0 - z) * n + z * h
    logits = h_new @ params["w_out_T"] + params["b_out"]
    return logits[:, None, :], h_new[None, :, :]


if __name__ == "__main__":
    # Small but deliberately "awkward" shapes: B not a multiple of 8 and V not a
    # multiple of 128, to exercise the padding + V-tiling path (tile_v=128 -> 4 tiles).
    B, L = 6, 8
    VOCAB, EMB, EN_H, DE_H = 500, 64, 64, 64

    key = jax.random.PRNGKey(0)
    kp, ki, kh, ke = jax.random.split(key, 4)

    params = make_params(kp, VOCAB, EMB, EN_H, DE_H)
    packed = pack_params(params, EMB)

    inputs = jax.random.randint(ki, (B, 1), 0, VOCAB, dtype=jnp.int32)        # [B, 1]
    last_hidden = jax.random.normal(kh, (1, B, DE_H), dtype=jnp.float32)      # [1, B, H]
    encoder_hiddens = jax.random.normal(ke, (B, L, EN_H), dtype=jnp.float32)  # [B, L, He]

    fwd = jax.jit(functools.partial(decoder_forward, tile_v=128))
    out, hid = fwd(inputs, last_hidden, encoder_hiddens, packed)
    jax.block_until_ready((out, hid))

    ref_out, ref_hid = reference_forward(inputs, last_hidden, encoder_hiddens, params)
    assert out.shape == (B, 1, VOCAB) and hid.shape == (1, B, DE_H)
    assert jnp.allclose(out, ref_out, atol=1e-4, rtol=1e-4), \
        float(jnp.max(jnp.abs(out - ref_out)))
    assert jnp.allclose(hid, ref_hid, atol=1e-4, rtol=1e-4), \
        float(jnp.max(jnp.abs(hid - ref_hid)))

    print("KERNEL_OK")
</pallas_src>

<mosaic_0001>
module attributes {stable_mosaic.version = 11 : i64} {
  func.func @out_proj_kernel(%arg0: i32, %arg1: memref<8x64xf32, #tpu.memory_space<vmem>>, %arg2: memref<64x128xf32, #tpu.memory_space<vmem>>, %arg3: memref<1x128xf32, #tpu.memory_space<vmem>>, %arg4: memref<8x128xf32, #tpu.memory_space<vmem>>) attributes {dimension_semantics = [#tpu.dimension_semantics<parallel>], iteration_bounds = array<i64: 4>, scalar_prefetch = 0 : i64, scratch_operands = 0 : i64, tpu.core_type = #tpu.core_type<tc>, window_params = [{pipeline_mode = #tpu.pipeline_mode<synchronous>, transform_indices = @transform_0, window_bounds = array<i64: 8, 64>}, {transform_indices = @transform_1, window_bounds = array<i64: 64, 128>}, {transform_indices = @transform_2, window_bounds = array<i64: 1, 128>}, {transform_indices = @transform_3, window_bounds = array<i64: 8, 128>}]} {
    %c0 = arith.constant 0 : index
    %c0_0 = arith.constant 0 : index
    %0 = vector.load %arg1[%c0, %c0_0] : memref<8x64xf32, #tpu.memory_space<vmem>>, vector<8x64xf32>
    %c0_1 = arith.constant 0 : index
    %c0_2 = arith.constant 0 : index
    %1 = vector.load %arg2[%c0_1, %c0_2] : memref<64x128xf32, #tpu.memory_space<vmem>>, vector<64x128xf32>
    %cst = arith.constant dense<0.000000e+00> : vector<8x128xf32>
    %2 = tpu.matmul %0, %1, %cst {dimension_numbers = #tpu.dot_dimension_numbers<[1], [0], [0], [1], [0, 0, 1, 1], [], []>} : vector<8x64xf32>, vector<64x128xf32>, vector<8x128xf32> -> vector<8x128xf32>
    %c0_3 = arith.constant 0 : index
    %c0_4 = arith.constant 0 : index
    %3 = vector.load %arg3[%c0_3, %c0_4] : memref<1x128xf32, #tpu.memory_space<vmem>>, vector<1x128xf32>
    %4 = vector.broadcast %3 : vector<1x128xf32> to vector<8x128xf32>
    %5 = arith.addf %2, %4 : vector<8x128xf32>
    %c0_5 = arith.constant 0 : index
    %c0_6 = arith.constant 0 : index
    %6 = vector.load %arg4[%c0_5, %c0_6] : memref<8x128xf32, #tpu.memory_space<vmem>>, vector<8x128xf32>
    tpu.vector_store %arg4[%c0_5, %c0_6], %5 {strides = array<i32>} : memref<8x128xf32, #tpu.memory_space<vmem>>, vector<8x128xf32>,
    return
  }
  func.func @transform_0(%arg0: i32) -> (i32, i32) {
    %c0_i32 = arith.constant 0 : i32
    %c0_i32_0 = arith.constant 0 : i32
    %c0_i32_1 = arith.constant 0 : i32
    return %c0_i32, %c0_i32_0 : i32, i32
  }
  func.func @transform_1(%arg0: i32) -> (i32, i32) {
    %c0_i32 = arith.constant 0 : i32
    %c0_i32_0 = arith.constant 0 : i32
    return %c0_i32, %arg0 : i32, i32
  }
  func.func @transform_2(%arg0: i32) -> (i32, i32) {
    %c0_i32 = arith.constant 0 : i32
    %c0_i32_0 = arith.constant 0 : i32
    return %c0_i32, %arg0 : i32, i32
  }
  func.func @transform_3(%arg0: i32) -> (i32, i32) {
    %c0_i32 = arith.constant 0 : i32
    %c0_i32_0 = arith.constant 0 : i32
    return %c0_i32, %arg0 : i32, i32
  }
}

module attributes {stable_mosaic.version = 11 : i64} {
  func.func @attn_gru_kernel(%arg0: memref<8x64xf32, #tpu.memory_space<vmem>>, %arg1: memref<8x64xf32, #tpu.memory_space<vmem>>, %arg2: memref<8x8x64xf32, #tpu.memory_space<vmem>>, %arg3: memref<1x64xf32, #tpu.memory_space<vmem>>, %arg4: memref<64x192xf32, #tpu.memory_space<vmem>>, %arg5: memref<64x192xf32, #tpu.memory_space<vmem>>, %arg6: memref<64x192xf32, #tpu.memory_space<vmem>>, %arg7: memref<1x192xf32, #tpu.memory_space<vmem>>, %arg8: memref<1x192xf32, #tpu.memory_space<vmem>>, %arg9: memref<8x64xf32, #tpu.memory_space<vmem>>) attributes {dimension_semantics = [], scalar_prefetch = 0 : i64, scratch_operands = 0 : i64, tpu.core_type = #tpu.core_type<tc>} {
    %c0 = arith.constant 0 : index
    %c0_0 = arith.constant 0 : index
    %0 = vector.load %arg0[%c0, %c0_0] : memref<8x64xf32, #tpu.memory_space<vmem>>, vector<8x64xf32>
    %c0_1 = arith.constant 0 : index
    %c0_2 = arith.constant 0 : index
    %1 = vector.load %arg1[%c0_1, %c0_2] : memref<8x64xf32, #tpu.memory_space<vmem>>, vector<8x64xf32>
    %c0_3 = arith.constant 0 : index
    %c0_4 = arith.constant 0 : index
    %c0_5 = arith.constant 0 : index
    %2 = vector.load %arg2[%c0_3, %c0_4, %c0_5] : memref<8x8x64xf32, #tpu.memory_space<vmem>>, vector<8x8x64xf32>
    %c0_6 = arith.constant 0 : index
    %c0_7 = arith.constant 0 : index
    %3 = vector.load %arg3[%c0_6, %c0_7] : memref<1x64xf32, #tpu.memory_space<vmem>>, vector<1x64xf32>
    %4 = vector.shape_cast %3 : vector<1x64xf32> to vector<1x1x64xf32>
    %5 = vector.broadcast %4 : vector<1x1x64xf32> to vector<8x8x64xf32>
    %6 = arith.mulf %2, %5 : vector<8x8x64xf32>
    %cst = arith.constant dense<0.000000e+00> : vector<8x8xf32>
    %7 = vector.multi_reduction <add>, %6, %cst [2] : vector<8x8x64xf32> to vector<8x8xf32>
    %cst_8 = arith.constant dense<0xFF800000> : vector<8xf32>
    %8 = vector.multi_reduction <maximumf>, %7, %cst_8 [1] : vector<8x8xf32> to vector<8xf32>
    %9 = vector.shape_cast %8 : vector<8xf32> to vector<8x1xf32>
    %10 = vector.broadcast %9 : vector<8x1xf32> to vector<8x8xf32>
    %11 = arith.subf %7, %10 : vector<8x8xf32>
    %12 = math.exp %11 : vector<8x8xf32>
    %cst_9 = arith.constant dense<0.000000e+00> : vector<8xf32>
    %13 = vector.multi_reduction <add>, %12, %cst_9 [1] : vector<8x8xf32> to vector<8xf32>
    %14 = vector.shape_cast %13 : vector<8xf32> to vector<8x1xf32>
    %15 = tpu.reciprocal %14 : vector<8x1xf32> -> vector<8x1xf32>
    %16 = vector.shape_cast %12 : vector<8x8xf32> to vector<8x1x8xf32>
    "tpu.trace_start"() <{level = 10 : i32, message = "bql,ble->bqe"}> : () -> ()
    %cst_10 = arith.constant dense<0.000000e+00> : vector<8x1x64xf32>
    %17 = tpu.matmul %16, %2, %cst_10 {dimension_numbers = #tpu.dot_dimension_numbers<[2], [1], [1], [2], [0, 0, 0, 1, 1, 2], [0], [0]>} : vector<8x1x8xf32>, vector<8x8x64xf32>, vector<8x1x64xf32> -> vector<8x1x64xf32>
    "tpu.trace_stop"() : () -> ()
    %18 = vector.shape_cast %17 : vector<8x1x64xf32> to vector<8x64xf32>
    %19 = vector.broadcast %15 : vector<8x1xf32> to vector<8x64xf32>
    %20 = arith.mulf %18, %19 : vector<8x64xf32>
    %c0_11 = arith.constant 0 : index
    %c0_12 = arith.constant 0 : index
    %21 = vector.load %arg4[%c0_11, %c0_12] : memref<64x192xf32, #tpu.memory_space<vmem>>, vector<64x192xf32>
    %cst_13 = arith.constant dense<0.000000e+00> : vector<8x192xf32>
    %22 = tpu.matmul %0, %21, %cst_13 {dimension_numbers = #tpu.dot_dimension_numbers<[1], [0], [0], [1], [0, 0, 1, 1], [], []>} : vector<8x64xf32>, vector<64x192xf32>, vector<8x192xf32> -> vector<8x192xf32>
    %c0_14 = arith.constant 0 : index
    %c0_15 = arith.constant 0 : index
    %23 = vector.load %arg5[%c0_14, %c0_15] : memref<64x192xf32, #tpu.memory_space<vmem>>, vector<64x192xf32>
    %cst_16 = arith.constant dense<0.000000e+00> : vector<8x192xf32>
    %24 = tpu.matmul %20, %23, %cst_16 {dimension_numbers = #tpu.dot_dimension_numbers<[1], [0], [0], [1], [0, 0, 1, 1], [], []>} : vector<8x64xf32>, vector<64x192xf32>, vector<8x192xf32> -> vector<8x192xf32>
    %25 = arith.addf %22, %24 : vector<8x192xf32>
    %c0_17 = arith.constant 0 : index
    %c0_18 = arith.constant 0 : index
    %26 = vector.load %arg7[%c0_17, %c0_18] : memref<1x192xf32, #tpu.memory_space<vmem>>, vector<1x192xf32>
    %27 = vector.broadcast %26 : vector<1x192xf32> to vector<8x192xf32>
    %28 = arith.addf %25, %27 : vector<8x192xf32>
    %c0_19 = arith.constant 0 : index
    %c0_20 = arith.constant 0 : index
    %29 = vector.load %arg6[%c0_19, %c0_20] : memref<64x192xf32, #tpu.memory_space<vmem>>, vector<64x192xf32>
    %cst_21 = arith.constant dense<0.000000e+00> : vector<8x192xf32>
    %30 = tpu.matmul %1, %29, %cst_21 {dimension_numbers = #tpu.dot_dimension_numbers<[1], [0], [0], [1], [0, 0, 1, 1], [], []>} : vector<8x64xf32>, vector<64x192xf32>, vector<8x192xf32> -> vector<8x192xf32>
    %c0_22 = arith.constant 0 : index
    %c0_23 = arith.constant 0 : index
    %31 = vector.load %arg8[%c0_22, %c0_23] : memref<1x192xf32, #tpu.memory_space<vmem>>, vector<1x192xf32>
    %32 = vector.broadcast %31 : vector<1x192xf32> to vector<8x192xf32>
    %33 = arith.addf %30, %32 : vector<8x192xf32>
    %34 = vector.extract_strided_slice %28 {offsets = [0, 0], sizes = [8, 64], strides = [1, 1]} : vector<8x192xf32> to vector<8x64xf32>
    %35 = vector.extract_strided_slice %33 {offsets = [0, 0], sizes = [8, 64], strides = [1, 1]} : vector<8x192xf32> to vector<8x64xf32>
    %36 = arith.addf %34, %35 : vector<8x64xf32>
    %37 = arith.negf %36 : vector<8x64xf32>
    %38 = math.exp %37 : vector<8x64xf32>
    %cst_24 = arith.constant 1.000000e+00 : f32
    %39 = vector.broadcast %cst_24 : f32 to vector<8x64xf32>
    %40 = arith.addf %39, %38 : vector<8x64xf32>
    %41 = arith.divf %39, %40 : vector<8x64xf32>
    %42 = vector.extract_strided_slice %28 {offsets = [0, 64], sizes = [8, 64], strides = [1, 1]} : vector<8x192xf32> to vector<8x64xf32>
    %43 = vector.extract_strided_slice %33 {offsets = [0, 64], sizes = [8, 64], strides = [1, 1]} : vector<8x192xf32> to vector<8x64xf32>
    %44 = arith.addf %42, %43 : vector<8x64xf32>
    %45 = arith.negf %44 : vector<8x64xf32>
    %46 = math.exp %45 : vector<8x64xf32>
    %cst_25 = arith.constant 1.000000e+00 : f32
    %47 = vector.broadcast %cst_25 : f32 to vector<8x64xf32>
    %48 = arith.addf %47, %46 : vector<8x64xf32>
    %49 = arith.divf %47, %48 : vector<8x64xf32>
    %50 = vector.extract_strided_slice %28 {offsets = [0, 128], sizes = [8, 64], strides = [1, 1]} : vector<8x192xf32> to vector<8x64xf32>
    %51 = vector.extract_strided_slice %33 {offsets = [0, 128], sizes = [8, 64], strides = [1, 1]} : vector<8x192xf32> to vector<8x64xf32>
    %52 = arith.mulf %41, %51 : vector<8x64xf32>
    %53 = arith.addf %50, %52 : vector<8x64xf32>
    %54 = math.tanh %53 : vector<8x64xf32>
    %cst_26 = arith.constant 1.000000e+00 : f32
    %55 = vector.broadcast %cst_26 : f32 to vector<8x64xf32>
    %56 = arith.subf %55, %49 : vector<8x64xf32>
    %57 = arith.mulf %56, %54 : vector<8x64xf32>
    %58 = arith.mulf %49, %1 : vector<8x64xf32>
    %59 = arith.addf %57, %58 : vector<8x64xf32>
    %c0_27 = arith.constant 0 : index
    %c0_28 = arith.constant 0 : index
    %60 = vector.load %arg9[%c0_27, %c0_28] : memref<8x64xf32, #tpu.memory_space<vmem>>, vector<8x64xf32>
    tpu.vector_store %arg9[%c0_27, %c0_28], %59 {strides = array<i32>} : memref<8x64xf32, #tpu.memory_space<vmem>>, vector<8x64xf32>,
    return
  }
}

</mosaic_0001>

<bundles_post_ra>
// kernel: decoder_forward.3
= control target key start
LH: loop header
LB: loop body
LE: loop exit
PB: predicated region body
PF: predicated region fallthrough
CT: control target
= control target key end

     0   :  { %s518_s12 = smov 0   ;;  %s520_s13 = smov 0   ;;  %s578_s0 = inlined_call_operand.vmem [shape: f32[8,64], index: 0, kind: input, shape index: {}]   ;;  %s579_s1 = inlined_call_operand.vmem [shape: f32[64,512], index: 1, kind: input, shape index: {}]   ;;  %s580_s2 = inlined_call_operand.vmem [shape: f32[1,512], index: 2, kind: input, shape index: {}]   ;;  %s581_s3 = inlined_call_operand.vmem [shape: f32[8,512], index: 3, kind: output, shape index: {}]  }
   0x1   :  { %s522_s14 = smov 0  }
   0x2 LB: > { %s405_s15 = sadd.s32 4294967295, %s494_s14   ;;  %s535_s16 = sadd.s32 1, %s494_s14   ;;  %s494_s14 = sphi %s522_s14, %s584_s14   ;;  %s490_s13 = sphi %s520_s13, %s583_s13   ;;  %s486_s12 = sphi %s518_s12, %s582_s12  }
   0x3   : > { %s38_s17 = ssub.s32 %s494_s14, %s535_s16  ;;  %s41_s18 = sadd.s32 1, %s490_s13 }
   0x4   : > { %p39_p0 = scmp.eq.s32.totalorder %s38_s17, 0  ;;  %p48_p1 = scmp.ne.s32.totalorder %s490_s13, %s486_s12 }
   0x5   : > { %p49_p2 = scmp.eq.s32.totalorder %s494_s14, 0  ;;  %p408_p4 = scmp.ge.s32.totalorder %s494_s14, 4 }
   0x6   : > { %s544_s19 = scalar_select %p39_p0, %s490_s13, %s41_s18  }
   0x7   : > { %p50_p3 = por %p49_p2, %p48_p1  ;;  %129 = sbr.rel (%p408_p4) target bundleno = 24 (0x18), region = 20 }
   0xc   : > { %132 = sbr.rel (!%p50_p3) target bundleno = 24 (0x18), region = 24  ;;  %s134_s20 = sand.u32 (%p50_p3), 1, %s490_s13  }
   0xd   : > { %s410_s21 = sshll.u32 (%p50_p3), %s494_s14, 3  ;;  %s409_s22 = sshll.u32 (%p50_p3), %s134_s20, 6 }
   0xe   : > { %s138_s25 = scalar_lea.vmem (%p50_p3), %s579_s1, %s410_s21  ;;  %s136_s26 = scalar_lea.vmem (%p50_p3), [#allocation2], %s409_s22 }
   0xf   : > { %v181_v0 = vld [vmem:[%s138_s25] sm:$0xff] (%p50_p3) }
  0x10   : > { %v183_v1 = vld [vmem:[%s138_s25 + $0x20] sm:$0xff] (%p50_p3)  ;;  %182 = vst [vmem:[%s136_s26] sm:$0xff] (%p50_p3), %v181_v0 }
  0x11   : > { %v185_v2 = vld [vmem:[%s138_s25 + $0x40] sm:$0xff]  ;;  %184 = vst [vmem:[%s136_s26 + $0x8] sm:$0xff] %v183_v1 }
  0x12   : > { %186 = vst [vmem:[%s136_s26 + $0x10] sm:$0xff] %v185_v2  ;;  %v187_v3 = vld [vmem:[%s138_s25 + $0x60] sm:$0xff] }
  0x13   : > { %v189_v4 = vld [vmem:[%s138_s25 + $0x80] sm:$0xff]  ;;  %188 = vst [vmem:[%s136_s26 + $0x18] sm:$0xff] %v187_v3 }
  0x14   : > { %v191_v5 = vld [vmem:[%s138_s25 + $0xa0] sm:$0xff]  ;;  %190 = vst [vmem:[%s136_s26 + $0x20] sm:$0xff] %v189_v4 }
  0x15   : > { %192 = vst [vmem:[%s136_s26 + $0x28] sm:$0xff] %v191_v5  ;;  %v193_v6 = vld [vmem:[%s138_s25 + $0xc0] sm:$0xff] }
  0x16   : > { %v195_v7 = vld [vmem:[%s138_s25 + $0xe0] sm:$0xff]  ;;  %194 = vst [vmem:[%s136_s26 + $0x30] sm:$0xff] %v193_v6 }
  0x17   : > { %196 = vst [vmem:[%s136_s26 + $0x38] sm:$0xff] %v195_v7 }
  0x18 PF: > { %p411_p5 = scmp.ge.s32.totalorder %s494_s14, 1  ;;  %p207_p6 = scmp.lt.s32.totalorder %s494_s14, 5 }
  0x1a   : > { %p208_p7 = pnand %p411_p5, %p207_p6 }
  0x1b   : > { %s214_s27 = sand.u32 (!%p208_p7), 1, %s486_s12   ;;  %p239_p8 = scmp.lt.s32.totalorder (!%p208_p7), %s405_s15, 3 }
  0x1c   : > { %211 = sbr.rel (%p208_p7) target bundleno = 246 (0xf6), region = 66  ;;  %s412_s28 = sshll.u32 (!%p208_p7), %s214_s27, 6 }
  0x1d   : > { %s216_s29 = scalar_lea.vmem (!%p208_p7), [#allocation2], %s412_s28 }
  0x21   : > { %v496_v8 = vmov 0.0   ;;  %vm497_vm0 = vmmov 0   ;;  %v254_v9 = vld [vmem:[%s216_s29 + $0x38] sm:$0xff]  ;;  %v253_v10 = vld [vmem:[%s216_s29 + $0x30] sm:$0xff]  ;;  %v252_v11 = vld [vmem:[%s216_s29 + $0x28] sm:$0xff]  ;;  %vm262_vm1 = vcmask 523264  }
  0x22   : > { %427 = vmatprep.subr.mxu0 %v496_v8  ;;  %443 = vmatprep.mubr.msk.f32.mxu0 %vm497_vm0, %v496_v8  ;;  %v251_v12 = vld [vmem:[%s216_s29 + $0x20] sm:$0xff]  ;;  %v250_v13 = vld [vmem:[%s216_s29 + $0x18] sm:$0xff]  ;;  %v249_v14 = vld [vmem:[%s216_s29 + $0x10] sm:$0xff]  ;;  %s586_s15 = smov (!%p239_p8, %s405_s15), 3 }
  0x23   : > { %428 = vmatpush3.msra.mxu0 %v254_v9  ;;  %v248_v15 = vld [vmem:[%s216_s29 + $0x8] sm:$0xff]  ;;  %v247_v16 = vld [vmem:[%s216_s29] sm:$0xff]  ;;  %s241_s7 = scalar_lea.vmem %s580_s2, %s586_s15  ;;  %s413_s8 = sshll.u32 %s586_s15, 3 }
  0x24   : > { %429 = vmatprep.subr.mxu0 %v496_v8  ;;  %v246_v17 = vld [vmem:[%s578_s0] sm:$0xff]  ;;  %s245_s11 = scalar_lea.vmem %s581_s3, %s413_s8 }
  0x25   : > { %430 = vmatpush3.msra.mxu0 %v253_v10  ;;  %v414_v18 = vld [vmem:[%s241_s7] ss:$0 sm:$0xff] }
  0x26   : > { %431 = vmatprep.subr.mxu0 %v496_v8 }
  0x27   : > { %432 = vmatpush3.msra.mxu0 %v252_v11 }
  0x28   : > { %433 = vmatprep.subr.mxu0 %v496_v8 }
  0x29   : > { %434 = vmatpush3.msra.mxu0 %v251_v12 }
  0x2a   : > { %435 = vmatprep.subr.mxu0 %v496_v8 }
  0x2b   : > { %436 = vmatpush3.msra.mxu0 %v250_v13 }
  0x2c   : > { %437 = vmatprep.subr.mxu0 %v496_v8 }
  0x2d   : > { %438 = vmatpush3.msra.mxu0 %v249_v14 }
  0x2e   : > { %439 = vmatprep.subr.mxu0 %v496_v8 }
  0x2f   : > { %440 = vmatpush3.msra.mxu0 %v248_v15 }
  0x30   : > { %441 = vmatprep.subr.mxu0 %v496_v8 }
  0x31   : > { %442 = vmatpush3.msra.mxu0 %v247_v16 }
  0x32   : > { %444 = vmatmul.mubr.msk.f32.vlgmr.msra.gmra.mxu0 %vm262_vm1, %v246_v17 }
  0xf2   : > { %v332_v19 = vpop.f32.mrf.mxu0 }
  0xf3   : > { %v333_v20 = vadd.f32 %v414_v18, %v332_v19 }
  0xf4   : > { %v445_v21 = vpop.f32.mrf.mxu0 }
  0xf5   : > { %336 = vst [vmem:[%s245_s11] sm:$0xff] %v333_v20 }
  0xf6 PF: > { %p10_p9 = scmp.ge.s32.totalorder %s535_s16, 6   ;;  %s582_s12 = smov %s490_s13 }
  0xf7   : > { %s583_s13 = smov %s544_s19  ;;  %s584_s14 = smov %s535_s16 }
  0xf8   :  { %12 = sbr.rel (!%p10_p9) target bundleno = 2 (0x2), region = 108 }

// kernel: decoder_forward.2
= control target key start
LH: loop header
LB: loop body
LE: loop exit
PB: predicated region body
PF: predicated region fallthrough
CT: control target
= control target key end

     0   :  { %vm57_vm0 = vcmask 523264   ;;  %v90_v25 = vlaneseq  ;;  %vm124_vm1 = vcmask 1041409   ;;  %vm126_vm2 = vcmask 1042434   ;;  %s1715_s2 = inlined_call_operand.vmem [shape: f32[8,8,64], index: 2, kind: input, shape index: {}]   ;;  %s1716_s3 = inlined_call_operand.vmem [shape: f32[1,64], index: 3, kind: input, shape index: {}]   ;;  %s1717_s5 = inlined_call_operand.vmem [shape: f32[64,192], index: 5, kind: input, shape index: {}]   ;;  %s1718_s4 = inlined_call_operand.vmem [shape: f32[64,192], index: 4, kind: input, shape index: {}]   ;;  %s1719_s6 = inlined_call_operand.vmem [shape: f32[64,192], index: 6, kind: input, shape index: {}]   ;;  %s1720_s0 = inlined_call_operand.vmem [shape: f32[8,64], index: 0, kind: input, shape index: {}]   ;;  %s1721_s1 = inlined_call_operand.vmem [shape: f32[8,64], index: 1, kind: input, shape index: {}]   ;;  %s1722_s7 = inlined_call_operand.vmem [shape: f32[1,192], index: 7, kind: input, shape index: {}]   ;;  %s1723_s8 = inlined_call_operand.vmem [shape: f32[1,192], index: 8, kind: input, shape index: {}]   ;;  %s1724_s9 = inlined_call_operand.vmem [shape: f32[8,64], index: 9, kind: output, shape index: {}]  }
   0x1   :  { %v1387_v0 = vld [vmem:[%s1715_s2] sm:$0xff]  ;;  %v1395_v2 = vld [vmem:[%s1715_s2 + $0x10] sm:$0xff]  ;;  %v1402_v5 = vld [vmem:[%s1715_s2 + $0x8] sm:$0xff]  ;;  %vm128_vm3 = vcmask 1043459   ;;  %vm130_vm4 = vcmask 1044484   ;;  %vm132_vm5 = vcmask 1045509  }
   0x2   :  { %v1231_v1 = vld [vmem:[%s1716_s3] ss:$0 sm:$0xff]  ;;  %v1407_v6 = vld [vmem:[%s1715_s2 + $0x18] sm:$0xff]  ;;  %v1419_v10 = vld [vmem:[%s1715_s2 + $0x28] sm:$0xff]  ;;  %v91_v26 = vand.u32 127, %v90_v25  ;;  %v1443_v27 = vshrl.u32 %v90_v25, 7 }
   0x3   :  { %v49_v3 = vmul.f32 %v1231_v1, %v1387_v0  ;;  %v51_v4 = vmul.f32 %v1231_v1, %v1395_v2  ;;  %v50_v7 = vmul.f32 %v1231_v1, %v1402_v5  ;;  %v52_v8 = vmul.f32 %v1231_v1, %v1407_v6  ;;  %v1414_v9 = vld [vmem:[%s1715_s2 + $0x20] sm:$0xff]  ;;  %v1430_v17 = vld [vmem:[%s1715_s2 + $0x30] sm:$0xff]  ;;  %v1435_v18 = vld [vmem:[%s1715_s2 + $0x38] sm:$0xff] }
   0x4   :  { %v53_v15 = vmul.f32 %v1231_v1, %v1414_v9  ;;  %v54_v16 = vmul.f32 %v1231_v1, %v1419_v10  ;;  %v55_v21 = vmul.f32 %v1231_v1, %v1430_v17  ;;  %v56_v22 = vmul.f32 %v1231_v1, %v1435_v18 }
   0x5   :  { %v58_v11 = vsel %vm57_vm0, %v49_v3, 0.0  ;;  %v64_v12 = vsel %vm57_vm0, %v51_v4, 0.0  ;;  %v61_v13 = vsel %vm57_vm0, %v50_v7, 0.0  ;;  %v67_v14 = vsel %vm57_vm0, %v52_v8, 0.0 }
   0x6   :  { %59 = vadd.xlane.f32.xlu0 %v58_v11  ;;  %65 = vadd.xlane.f32.xlu1 %v64_v12  ;;  %v70_v19 = vsel %vm57_vm0, %v53_v15, 0.0  ;;  %v73_v20 = vsel %vm57_vm0, %v54_v16, 0.0  ;;  %v76_v23 = vsel %vm57_vm0, %v55_v21, 0.0  ;;  %v79_v24 = vsel %vm57_vm0, %v56_v22, 0.0 }
   0x7   :  { %v1446_v30 = vsub.s32 %v91_v26, %v1443_v27  ;;  %vm134_vm6 = vcmask 1046534   ;;  %vm136_vm7 = vcmask 1047559   ;;  %vm139_vm8 = vcmask 64512  }
   0x8   :  { %v1330_v53 = vmov 0   ;;  %v1468_v54 = vsub.s32 0, %v1443_v27  ;;  %v1471_v55 = vsub.s32 1, %v1443_v27  ;;  %v154_v56 = vsub.s32 2, %v1443_v27 }
   0x9   :  { %1305 = vset.pattern.permute.xlu0 %v1330_v53  ;;  %1304 = vset.pattern.permute.xlu1 %v1330_v53  ;;  %v158_v57 = vsub.s32 3, %v1443_v27  ;;  %v162_v62 = vsub.s32 4, %v1443_v27  ;;  %v166_v11 = vsub.s32 5, %v1443_v27  ;;  %v170_v15 = vsub.s32 6, %v1443_v27 }
   0xa   :  { %62 = vadd.xlane.f32.xlu0 %v61_v13  ;;  %68 = vadd.xlane.f32.xlu1 %v67_v14  ;;  %v174_v21 = vsub.s32 7, %v1443_v27  ;;  %vm1332_vm9 = vmmov 0  }
   0xe   :  { %71 = vadd.xlane.f32.xlu0 %v70_v19  ;;  %74 = vadd.xlane.f32.xlu1 %v73_v20 }
  0x12   :  { %77 = vadd.xlane.f32.xlu0 %v76_v23  ;;  %80 = vadd.xlane.f32.xlu1 %v79_v24 }
  0x8f   :  { %v60_v28 = vpop.xlane.xlu0 %59  ;;  %v66_v29 = vpop.xlane.xlu1 %65 }
  0x90   :  { %v95_v33 = vrot.slane %v60_v28, %v1446_v30  ;;  %v103_v36 = vrot.slane %v66_v29, %v1446_v30 }
  0x93   :  { %v63_v31 = vpop.xlane.xlu0 %62  ;;  %v69_v32 = vpop.xlane.xlu1 %68 }
  0x94   :  { %v99_v34 = vrot.slane %v63_v31, %v1446_v30  ;;  %v107_v35 = vrot.slane %v69_v32, %v1446_v30 }
  0x96   :  { %v125_v37 = vsel %vm124_vm1, %v99_v34, %v95_v33 }
  0x97   :  { %v127_v38 = vsel %vm126_vm2, %v103_v36, %v125_v37  ;;  %v72_v39 = vpop.xlane.xlu0 %71  ;;  %v75_v40 = vpop.xlane.xlu1 %74 }
  0x98   :  { %v129_v41 = vsel %vm128_vm3, %v107_v35, %v127_v38  ;;  %v111_v42 = vrot.slane %v72_v39, %v1446_v30  ;;  %v115_v43 = vrot.slane %v75_v40, %v1446_v30 }
  0x9a   :  { %v131_v44 = vsel %vm130_vm4, %v111_v42, %v129_v41 }
  0x9b   :  { %v78_v45 = vpop.xlane.xlu0 %77  ;;  %v1458_v46 = vpop.xlane.xlu1 %80  ;;  %v133_v49 = vsel %vm132_vm5, %v115_v43, %v131_v44 }
  0x9c   :  { %v119_v47 = vrot.slane %v78_v45, %v1446_v30  ;;  %v123_v48 = vrot.slane %v1458_v46, %v1446_v30 }
  0x9e   :  { %v135_v50 = vsel %vm134_vm6, %v119_v47, %v133_v49 }
  0x9f   :  { %v137_v51 = vsel %vm136_vm7, %v123_v48, %v135_v50 }
  0xa0   :  { %v140_v52 = vsel %vm139_vm8, %v137_v51, -inf }
  0xa1   :  { %141 = vmax.xlane.f32.xlu0 %v140_v52 }
 0x12a   :  { %v142_v58 = vpop.xlane.xlu0 %141 }
 0x12b   :  { %v147_v59 = vrot.slane %v142_v58, %v1468_v54  ;;  %v151_v60 = vrot.slane %v142_v58, %v1471_v55  ;;  %v155_v61 = vrot.slane %v142_v58, %v154_v56  ;;  %v159_v63 = vrot.slane %v142_v58, %v158_v57 }
 0x12c   :  { %v163_v12 = vrot.slane %v142_v58, %v162_v62  ;;  %v167_v16 = vrot.slane %v142_v58, %v166_v11  ;;  %v171_v22 = vrot.slane %v142_v58, %v170_v15  ;;  %v175_v25 = vrot.slane %v142_v58, %v174_v21  ;;  %v898_v62 = vld [vmem:[%s1718_s4 + $0x70] sm:$0xff]  ;;  %v909_v11 = vld [vmem:[%s1717_s5 + $0x48] sm:$0xff]  ;;  %v907_v15 = vld [vmem:[%s1717_s5 + $0x38] sm:$0xff] }
 0x12d   :  { %v184_v1 = vsub.f32 %v60_v28, %v147_v59  ;;  %v185_v3 = vsub.f32 %v63_v31, %v151_v60  ;;  %v186_v4 = vsub.f32 %v66_v29, %v155_v61  ;;  %v187_v13 = vsub.f32 %v69_v32, %v159_v63  ;;  %v915_v59 = vld [vmem:[%s1717_s5 + $0x78] sm:$0xff]  ;;  %v914_v60 = vld [vmem:[%s1717_s5 + $0x70] sm:$0xff]  ;;  %v913_v61 = vld [vmem:[%s1717_s5 + $0x68] sm:$0xff] }
 0x12e   :  { %v188_v19 = vsub.f32 %v72_v39, %v163_v12  ;;  %v189_v23 = vsub.f32 %v75_v40, %v167_v16  ;;  %v190_v26 = vsub.f32 %v78_v45, %v171_v22  ;;  %v1331_v32 = vmov 0.0   ;;  %v912_v63 = vld [vmem:[%s1717_s5 + $0x60] sm:$0xff]  ;;  %v894_v12 = vld [vmem:[%s1718_s4 + $0x50] sm:$0xff]  ;;  %v905_v21 = vld [vmem:[%s1717_s5 + $0x28] sm:$0xff] }
 0x12f   :  { %v192_v7 = vmul.f32 1.442695, %v184_v1  ;;  %v194_v8 = vmul.f32 1.442695, %v185_v3  ;;  %v196_v14 = vmul.f32 1.442695, %v186_v4  ;;  %1260 = vmatprep.subr.mxu1 %v1331_v32  ;;  %v191_v33 = vsub.f32 %v1458_v46, %v175_v25  ;;  %1262 = vmatprep.mubr.msk.f32.mxu1 %vm1332_vm9, %v1331_v32 }
 0x130   :  { %v198_v20 = vmul.f32 1.442695, %v187_v13  ;;  %v200_v24 = vmul.f32 1.442695, %v188_v19  ;;  %v202_v28 = vmul.f32 1.442695, %v189_v23  ;;  %1261 = vmatpush3.msra.mxu1 %v1387_v0  ;;  %1280 = vmatprep.subr.mxu0 %v1331_v32 }
 0x131   :  { %1306 = vpow2.f32 %v192_v7  ;;  %v204_v27 = vmul.f32 1.442695, %v190_v26  ;;  %1265 = vmatprep.subr.mxu1 %v1331_v32  ;;  %1282 = vmatprep.mubr.msk.f32.mxu0 %vm1332_vm9, %v1331_v32  ;;  %v206_v0 = vmul.f32 1.442695, %v191_v33  ;;  %v897_v1 = vld [vmem:[%s1718_s4 + $0x68] sm:$0xff]  ;;  %v911_v3 = vld [vmem:[%s1717_s5 + $0x58] sm:$0xff] }
 0x132   :  { %1308 = vpow2.f32 %v194_v8  ;;  %1281 = vmatpush3.msra.mxu0 %v1414_v9  ;;  %v896_v4 = vld [vmem:[%s1718_s4 + $0x60] sm:$0xff]  ;;  %v910_v7 = vld [vmem:[%s1717_s5 + $0x50] sm:$0xff]  ;;  %v895_v8 = vld [vmem:[%s1718_s4 + $0x58] sm:$0xff] }
 0x133   :  { %1310 = vpow2.f32 %v196_v14  ;;  %1290 = vmatprep.subr.mxu0 %v1331_v32  ;;  %v908_v13 = vld [vmem:[%s1717_s5 + $0x40] sm:$0xff]  ;;  %v893_v14 = vld [vmem:[%s1718_s4 + $0x48] sm:$0xff]  ;;  %v906_v19 = vld [vmem:[%s1717_s5 + $0x30] sm:$0xff] }
 0x134   :  { %1312 = vpow2.f32 %v198_v20  ;;  %v892_v16 = vld [vmem:[%s1718_s4 + $0x40] sm:$0xff]  ;;  %v891_v20 = vld [vmem:[%s1718_s4 + $0x38] sm:$0xff]  ;;  %v890_v22 = vld [vmem:[%s1718_s4 + $0x30] sm:$0xff] }
 0x135   :  { %1314 = vpow2.f32 %v200_v24  ;;  %v904_v23 = vld [vmem:[%s1717_s5 + $0x20] sm:$0xff]  ;;  %v889_v24 = vld [vmem:[%s1718_s4 + $0x28] sm:$0xff]  ;;  %v903_v25 = vld [vmem:[%s1717_s5 + $0x18] sm:$0xff] }
 0x136   :  { %1316 = vpow2.f32 %v202_v28  ;;  %v888_v26 = vld [vmem:[%s1718_s4 + $0x20] sm:$0xff]  ;;  %v902_v28 = vld [vmem:[%s1717_s5 + $0x10] sm:$0xff] }
 0x137   :  { %1318 = vpow2.f32 %v204_v27  ;;  %v886_v33 = vld [vmem:[%s1718_s4 + $0x10] sm:$0xff]  ;;  %v900_v27 = vld [vmem:[%s1717_s5] sm:$0xff] }
 0x138   :  { %1320 = vpow2.f32 %v206_v0  ;;  %v884_v0 = vld [vmem:[%s1718_s4] sm:$0xff] }
 0x13e   :  { %v1307_v29 = vpop.eup %1306 }
 0x13f   :  { %v1309_v31 = vpop.eup %1308  ;;  %217 = vperm.xlu1 %1304, %v1307_v29   ;;  %v887_v29 = vld [vmem:[%s1718_s4 + $0x18] sm:$0xff] }
 0x140   :  { %220 = vperm.xlu0 %1305, %v1309_v31   ;;  %v1311_v34 = vpop.eup %1310  ;;  %v901_v31 = vld [vmem:[%s1717_s5 + $0x8] sm:$0xff] }
 0x141   :  { %v1313_v35 = vpop.eup %1312 }
 0x142   :  { %v1315_v36 = vpop.eup %1314 }
 0x143   :  { %223 = vperm.xlu1 %1304, %v1311_v34   ;;  %v1317_v37 = vpop.eup %1316  ;;  %v885_v34 = vld [vmem:[%s1718_s4 + $0x8] sm:$0xff] }
 0x144   :  { %v1319_v38 = vpop.eup %1318 }
 0x145   :  { %v1321_v39 = vpop.eup %1320 }
 0x147   :  { %226 = vperm.xlu1 %1304, %v1313_v35   ;;  %v1114_v35 = vld [vmem:[%s1719_s6 + $0x78] sm:$0xff] }
 0x14b   :  { %229 = vperm.xlu1 %1304, %v1315_v36   ;;  %v32_v36 = vld [vmem:[%s1720_s0] sm:$0xff] }
 0x14f   :  { %232 = vperm.xlu1 %1304, %v1317_v37  }
 0x153   :  { %235 = vperm.xlu1 %1304, %v1319_v38  }
 0x157   :  { %238 = vperm.xlu1 %1304, %v1321_v39  }
 0x1ba   :  { %v218_v40 = vpop.permute.xlu1 %217 }
 0x1bb   :  { %v243_v41 = vrot.slane %v218_v40, %v1446_v30  ;;  %v221_v42 = vpop.permute.xlu0 %220 }
 0x1bc   :  { %v247_v43 = vrot.slane %v221_v42, %v1446_v30 }
 0x1bd   :  { %1263 = vmatmul.mubr.msk.f32.vlgmr.msra.gmra.mxu1 %vm139_vm8, %v243_v41 }
 0x1be   :  { %v224_v9 = vpop.permute.xlu1 %223  ;;  %1266 = vmatpush3.msra.mxu1 %v1402_v5  ;;  %1267 = vmatprep.mubr.msk.f32.mxu1 %vm1332_vm9, %v1331_v32 }
 0x1bf   :  { %1270 = vmatprep.subr.mxu1 %v1331_v32  ;;  %v251_v45 = vrot.slane %v224_v9, %v1446_v30 }
 0x1c1   :  { %1268 = vmatmul.mubr.msk.f32.vlgmr.msra.gmra.mxu1 %vm139_vm8, %v247_v43 }
 0x1c2   :  { %v227_v44 = vpop.permute.xlu1 %226  ;;  %1271 = vmatpush3.msra.mxu1 %v1395_v2  ;;  %1272 = vmatprep.mubr.msk.f32.mxu1 %vm1332_vm9, %v1331_v32 }
 0x1c3   :  { %1275 = vmatprep.subr.mxu1 %v1331_v32  ;;  %v255_v46 = vrot.slane %v227_v44, %v1446_v30 }
 0x1c5   :  { %1273 = vmatmul.mubr.msk.f32.vlgmr.msra.gmra.mxu1 %vm139_vm8, %v251_v45 }
 0x1c6   :  { %v230_v5 = vpop.permute.xlu1 %229  ;;  %1276 = vmatpush3.msra.mxu1 %v1407_v6  ;;  %1277 = vmatprep.mubr.msk.f32.mxu1 %vm1332_vm9, %v1331_v32 }
 0x1c7   :  { %v259_v47 = vrot.slane %v230_v5, %v1446_v30  ;;  %1285 = vmatprep.subr.mxu1 %v1331_v32 }
 0x1c9   :  { %1278 = vmatmul.mubr.msk.f32.vlgmr.msra.gmra.mxu1 %vm139_vm8, %v255_v46  ;;  %1283 = vmatmul.mubr.msk.f32.vlgmr.msra.gmra.mxu0 %vm139_vm8, %v259_v47 }
 0x1ca   :  { %v233_v2 = vpop.permute.xlu1 %232  ;;  %1286 = vmatpush3.msra.mxu1 %v1419_v10  ;;  %1287 = vmatprep.mubr.msk.f32.mxu1 %vm1332_vm9, %v1331_v32  ;;  %v272_v10 = vsel %vm124_vm1, %v247_v43, %v243_v41 }
 0x1cb   :  { %v263_v6 = vrot.slane %v233_v2, %v1446_v30  ;;  %1291 = vmatpush3.msra.mxu0 %v1430_v17  ;;  %1292 = vmatprep.mubr.msk.f32.mxu0 %vm1332_vm9, %v1331_v32  ;;  %v273_v50 = vsel %vm126_vm2, %v251_v45, %v272_v10 }
 0x1cc   :  { %1295 = vmatprep.subr.mxu1 %v1331_v32  ;;  %v274_v17 = vsel %vm128_vm3, %v255_v46, %v273_v50  ;;  %956 = vmatprep.subr.mxu0 %v915_v59 }
 0x1cd   :  { %1288 = vmatmul.mubr.msk.f32.vlgmr.msra.gmra.mxu1 %vm139_vm8, %v263_v6  ;;  %v275_v51 = vsel %vm130_vm4, %v259_v47, %v274_v17 }
 0x1ce   :  { %v236_v48 = vpop.permute.xlu1 %235  ;;  %1296 = vmatpush3.msra.mxu1 %v1435_v18  ;;  %1297 = vmatprep.mubr.msk.f32.mxu1 %vm1332_vm9, %v1331_v32  ;;  %v276_v18 = vsel %vm132_vm5, %v263_v6, %v275_v51 }
 0x1cf   :  { %v267_v49 = vrot.slane %v236_v48, %v1446_v30 }
 0x1d1   :  { %1293 = vmatmul.mubr.msk.f32.vlgmr.msra.gmra.mxu0 %vm139_vm8, %v267_v49  ;;  %v277_v56 = vsel %vm134_vm6, %v267_v49, %v276_v18 }
 0x1d2   :  { %v239_v52 = vpop.permute.xlu1 %238  ;;  %1004 = vmatprep.mubr.f32.mxu0 %v1331_v32  ;;  %957 = vmatpush1.msra.mxu0 %v914_v60 }
 0x1d3   :  { %v271_v53 = vrot.slane %v239_v52, %v1446_v30  ;;  %v899_v30 = vld [vmem:[%s1718_s4 + $0x78] sm:$0xff]  ;;  %958 = vmatprep.subr.mxu0 %v913_v61 }
 0x1d4   :  { %1030 = vmatprep.subr.mxu1 %v899_v30  ;;  %959 = vmatpush1.msra.mxu0 %v912_v63 }
 0x1d5   :  { %1298 = vmatmul.mubr.msk.f32.vlgmr.msra.gmra.mxu1 %vm139_vm8, %v271_v53  ;;  %v278_v57 = vsel %vm136_vm7, %v271_v53, %v277_v56  ;;  %960 = vmatprep.subr.mxu0 %v911_v3 }
 0x1d6   :  { %v280_v58 = vsel %vm139_vm8, %v278_v57, 0.0  ;;  %1078 = vmatprep.mubr.f32.mxu1 %v1331_v32  ;;  %1031 = vmatpush1.msra.mxu1 %v898_v62 }
 0x1d7   :  { %281 = vadd.xlane.f32.xlu1 %v280_v58  ;;  %1032 = vmatprep.subr.mxu1 %v897_v1 }
 0x1d8   :  { %1033 = vmatpush1.msra.mxu1 %v896_v4  ;;  %961 = vmatpush1.msra.mxu0 %v910_v7 }
 0x1d9   :  { %1034 = vmatprep.subr.mxu1 %v895_v8  ;;  %962 = vmatprep.subr.mxu0 %v909_v11 }
 0x1da   :  { %1035 = vmatpush1.msra.mxu1 %v894_v12  ;;  %963 = vmatpush1.msra.mxu0 %v908_v13 }
 0x1db   :  { %1036 = vmatprep.subr.mxu1 %v893_v14  ;;  %964 = vmatprep.subr.mxu0 %v907_v15 }
 0x1dc   :  { %1037 = vmatpush1.msra.mxu1 %v892_v16  ;;  %965 = vmatpush1.msra.mxu0 %v906_v19 }
 0x1dd   :  { %1038 = vmatprep.subr.mxu1 %v891_v20  ;;  %966 = vmatprep.subr.mxu0 %v905_v21  ;;  %v1113_v21 = vld [vmem:[%s1719_s6 + $0x70] sm:$0xff] }
 0x1de   :  { %1039 = vmatpush1.msra.mxu1 %v890_v22  ;;  %967 = vmatpush1.msra.mxu0 %v904_v23  ;;  %v1112_v23 = vld [vmem:[%s1719_s6 + $0x68] sm:$0xff] }
 0x1df   :  { %1040 = vmatprep.subr.mxu1 %v889_v24  ;;  %968 = vmatprep.subr.mxu0 %v903_v25  ;;  %v1111_v24 = vld [vmem:[%s1719_s6 + $0x60] sm:$0xff]  ;;  %v1110_v25 = vld [vmem:[%s1719_s6 + $0x58] sm:$0xff] }
 0x1e0   :  { %1041 = vmatpush1.msra.mxu1 %v888_v26  ;;  %969 = vmatpush1.msra.mxu0 %v902_v28  ;;  %v1109_v26 = vld [vmem:[%s1719_s6 + $0x50] sm:$0xff]  ;;  %v1108_v28 = vld [vmem:[%s1719_s6 + $0x48] sm:$0xff] }
 0x1e1   :  { %1042 = vmatprep.subr.mxu1 %v887_v29  ;;  %970 = vmatprep.subr.mxu0 %v901_v31  ;;  %v1107_v29 = vld [vmem:[%s1719_s6 + $0x40] sm:$0xff]  ;;  %v1105_v31 = vld [vmem:[%s1719_s6 + $0x30] sm:$0xff] }
 0x1e2   :  { %1043 = vmatpush1.msra.mxu1 %v886_v33  ;;  %971 = vmatpush1.msra.mxu0 %v900_v27  ;;  %v1104_v33 = vld [vmem:[%s1719_s6 + $0x28] sm:$0xff]  ;;  %v1103_v27 = vld [vmem:[%s1719_s6 + $0x20] sm:$0xff] }
 0x1e3   :  { %1044 = vmatprep.subr.mxu1 %v885_v34  ;;  %1146 = vmatprep.subr.mxu0 %v1114_v35  ;;  %v1102_v34 = vld [vmem:[%s1719_s6 + $0x18] sm:$0xff]  ;;  %v1100_v35 = vld [vmem:[%s1719_s6 + $0x8] sm:$0xff] }
 0x1e4   :  { %1045 = vmatpush1.msra.mxu1 %v884_v0  ;;  %v1101_v0 = vld [vmem:[%s1719_s6 + $0x10] sm:$0xff] }
 0x1e5   :  { %1241 = vmatmul.mubr.msk.f32.vlgmr.msra.gmra.mxu1 %vm57_vm0, %v32_v36  ;;  %v1099_v36 = vld [vmem:[%s1719_s6] sm:$0xff] }
 0x260   :  { %v282_v37 = vpop.xlane.xlu1 %281 }
 0x261   :  { %1322 = vrcp.f32 %v282_v37  ;;  %v33_v37 = vld [vmem:[%s1721_s1] sm:$0xff]  ;;  %s1333_s1 = smov 64  }
 0x26e   :  { %v1323_v42 = vpop.eup %1322 }
 0x26f   :  { %v861_v44 = vrot.slane %v1323_v42, 1  ;;  %v862_v45 = vrot.slane %v1323_v42, 2  ;;  %v863_v2 = vrot.slane %v1323_v42, 3  ;;  %v864_v50 = vrot.slane %v1323_v42, 4 }
 0x270   :  { %v865_v52 = vrot.slane %v1323_v42, 5  ;;  %v866_v60 = vrot.slane %v1323_v42, 6  ;;  %v867_v8 = vrot.slane %v1323_v42, 7 }
 0x27d   :  { %v352_v38 = vpop.f32.mrf.mxu1 }
 0x27e   :  { %v876_v57 = vmul.f32 %v1323_v42, %v352_v38 }
 0x27f   :  { %v1264_v39 = vpop.f32.mrf.mxu1 }
 0x281   :  { %v424_v40 = vpop.f32.mrf.mxu1 }
 0x282   :  { %v877_v47 = vmul.f32 %v861_v44, %v424_v40  ;;  %v1085_v40 = vld [vmem:[%s1722_s7] sm:$0x3] }
 0x283   :  { %v1269_v41 = vpop.f32.mrf.mxu1 }
 0x284   :  { %v924_v51 = vrot.slane %v877_v47, 7  ;;  %v1115_v41 = vld [vmem:[%s1723_s8] sm:$0x3] }
 0x285   :  { %v496_v9 = vpop.f32.mrf.mxu1 }
 0x286   :  { %v878_v6 = vmul.f32 %v862_v45, %v496_v9  ;;  %v925_v61 = vsel %vm124_vm1, %v924_v51, %v876_v57  ;;  %v1090_v9 = vrot.slane %v1085_v40, %v1468_v54  ;;  %v1094_v51 = vrot.slane %v1085_v40, %v1471_v55 }
 0x287   :  { %v1274_v43 = vpop.f32.mrf.mxu1 }
 0x288   :  { %v926_v18 = vrot.slane %v878_v6, 6  ;;  %v1120_v43 = vrot.slane %v1115_v41, %v1468_v54 }
 0x289   :  { %v568_v5 = vpop.f32.mrf.mxu1  ;;  %v640_v46 = vpop.f32.mrf.mxu0 }
 0x28a   :  { %v879_v49 = vmul.f32 %v863_v2, %v568_v5  ;;  %v880_v53 = vmul.f32 %v864_v50, %v640_v46  ;;  %v927_v63 = vsel %vm126_vm2, %v926_v18, %v925_v61 }
 0x28b   :  { %v1279_v48 = vpop.f32.mrf.mxu1  ;;  %v1284_v10 = vpop.f32.mrf.mxu0 }
 0x28c   :  { %v928_v58 = vrot.slane %v879_v49, 5  ;;  %v930_v1 = vrot.slane %v880_v53, 4  ;;  %v1124_v49 = vrot.slane %v1115_v41, %v1471_v55 }
 0x28d   :  { %v712_v17 = vpop.f32.mrf.mxu1 }
 0x28e   :  { %v881_v59 = vmul.f32 %v865_v52, %v712_v17  ;;  %v929_v4 = vsel %vm128_vm3, %v928_v58, %v927_v63 }
 0x28f   :  { %v1289_v56 = vpop.f32.mrf.mxu1  ;;  %v931_v14 = vsel %vm130_vm4, %v930_v1, %v929_v4 }
 0x290   :  { %v932_v7 = vrot.slane %v881_v59, 3 }
 0x291   :  { %v784_v30 = vpop.f32.mrf.mxu0 }
 0x292   :  { %v882_v62 = vmul.f32 %v866_v60, %v784_v30  ;;  %v933_v16 = vsel %vm132_vm5, %v932_v7, %v931_v14 }
 0x293   :  { %v1294_v3 = vpop.f32.mrf.mxu0 }
 0x294   :  { %v934_v11 = vrot.slane %v882_v62, 2 }
 0x295   :  { %v856_v12 = vpop.f32.mrf.mxu1 }
 0x296   :  { %v883_v13 = vmul.f32 %v867_v8, %v856_v12  ;;  %v935_v20 = vsel %vm134_vm6, %v934_v11, %v933_v16 }
 0x297   :  { %v1299_v15 = vpop.f32.mrf.mxu1 }
 0x298   :  { %v936_v19 = vrot.slane %v883_v13, 1 }
 0x29a   :  { %v937_v22 = vsel %vm136_vm7, %v936_v19, %v935_v20 }
 0x29b   :  { %1240 = vmatmul.mubr.msk.f32.vlgmr.msra.gmra.mxu0 %vm57_vm0, %v937_v22 }
 0x29c   :  { %1147 = vmatpush1.msra.mxu0 %v1113_v21  ;;  %1194 = vmatprep.mubr.f32.mxu0 %v1331_v32  ;;  %v1106_v32 = vld [vmem:[%s1719_s6 + $0x38] sm:$0xff] }
 0x29d   :  { %1148 = vmatprep.subr.mxu0 %v1112_v23 }
 0x29e   :  { %1149 = vmatpush1.msra.mxu0 %v1111_v24 }
 0x29f   :  { %1150 = vmatprep.subr.mxu0 %v1110_v25 }
 0x2a0   :  { %1151 = vmatpush1.msra.mxu0 %v1109_v26 }
 0x2a1   :  { %1152 = vmatprep.subr.mxu0 %v1108_v28 }
 0x2a2   :  { %1153 = vmatpush1.msra.mxu0 %v1107_v29 }
 0x2a3   :  { %1154 = vmatprep.subr.mxu0 %v1106_v32 }
 0x2a4   :  { %1155 = vmatpush1.msra.mxu0 %v1105_v31 }
 0x2a5   :  { %1156 = vmatprep.subr.mxu0 %v1104_v33  ;;  %v1080_v39 = vpop.f32.mrf.mxu1 }
 0x2a6   :  { %1157 = vmatpush1.msra.mxu0 %v1103_v27 }
 0x2a7   :  { %1158 = vmatprep.subr.mxu0 %v1102_v34  ;;  %v1082_v10 = vpop.f32.mrf.mxu1 }
 0x2a8   :  { %1159 = vmatpush1.msra.mxu0 %v1101_v0 }
 0x2a9   :  { %1160 = vmatprep.subr.mxu0 %v1100_v35 }
 0x2aa   :  { %1161 = vmatpush1.msra.mxu0 %v1099_v36 }
 0x2ab   :  { %1242 = vmatmul.mubr.msk.f32.vlgmr.msra.gmra.mxu0 %vm57_vm0, %v33_v37 }
 0x35b   :  { %v1006_v38 = vpop.f32.mrf.mxu0 }
 0x35c   :  { %v1081_v42 = vadd.f32 %v1080_v39, %v1006_v38 }
 0x35d   :  { %v1008_v44 = vpop.f32.mrf.mxu0 }
 0x35e   :  { %v1097_v5 = vadd.f32 %v1090_v9, %v1081_v42  ;;  %v1083_v17 = vadd.f32 %v1082_v10, %v1008_v44 }
 0x360   :  { %v1098_v54 = vadd.f32 %v1094_v51, %v1083_v17 }
 0x36b   :  { %v1196_v45 = vpop.f32.mrf.mxu0 }
 0x36c   :  { %v1197_v46 = vadd.f32 %v1196_v45, %v1120_v43 }
 0x36d   :  { %v1198_v50 = vpop.f32.mrf.mxu0 }
 0x36e   :  { %v1201_v47 = vadd.f32 %v1197_v46, %v1097_v5  ;;  %v1199_v52 = vadd.f32 %v1198_v50, %v1124_v49 }
 0x370   :  { %v1243_v2 = vmul.f32 -1.442695, %v1201_v47 }
 0x372   :  { %1324 = vpow2.f32 %v1243_v2 }
 0x37f   :  { %v1325_v6 = vpop.eup %1324 }
 0x380   :  { %v1205_v48 = vadd.f32 1.0, %v1325_v6 }
 0x382   :  { %1326 = vrcp.f32 %v1205_v48 }
 0x38f   :  { %v1327_v18 = vpop.eup %1326 }
 0x390   :  { %v1208_v53 = vmul.f32 %v1327_v18, %v1199_v52  ;;  %v1211_v59 = vsub.f32 1.0, %v1327_v18 }
 0x392   :  { %v1209_v56 = vadd.f32 %v1208_v53, %v1098_v54 }
 0x394   :  { %1328 = vtanh.f32 %v1209_v56 }
 0x3a1   :  { %v1329_v57 = vpop.eup %1328 }
 0x3a2   :  { %1213 = vrot.lane.b32.xlu0 %v1329_v57, %s1333_s1 }
 0x3a6   :  { %1217 = vrot.lane.b32.xlu0 %v33_v37, %s1333_s1 }
 0x414   :  { %v1214_v58 = vpop.permute.xlu0 %1213 }
 0x415   :  { %v1216_v30 = vmul.f32 %v1214_v58, %v1211_v59 }
 0x418   :  { %v1218_v60 = vpop.permute.xlu0 %1217 }
 0x419   :  { %v1220_v61 = vmul.f32 %v1327_v18, %v1218_v60 }
 0x41b   :  { %v1221_v62 = vadd.f32 %v1220_v61, %v1216_v30 }
 0x41d   :  { %1223 = vrot.lane.b32.xlu0 %v1221_v62, %s1333_s1 }
 0x48f   :  { %v1224_v63 = vpop.permute.xlu0 %1223 }
 0x490   :  { %1226 = vst.msk [vmem:[%s1724_s9] sm:$0xff] %vm57_vm0, %v1224_v63 }

</bundles_post_ra>
